<compile_context>
chip_gen: v7x
topology: tpu7x:2x2x1
jax: 0.10.0
libtpu: 0.0.40
codegen_flags: <defaults>
</compile_context>

<pallas_src>
import jax
import jax.numpy as jnp
from jax.experimental import pallas as pl
from jax.experimental.pallas import tpu as pltpu

LANE = 128          # TPU lane width
_H1, _H2, _H3 = 128, 256, 128


def _round_up(n, m):
    return ((n + m - 1) // m) * m


# --------------------------------------------------------------------------
# Kernel: one batch tile of the fused 4-layer MLP.
# --------------------------------------------------------------------------
def dqn_kernel(x_ref,
               w1_ref, b1_ref,
               w2_ref, b2_ref,
               w3_ref, b3_ref,
               w4_ref, b4_ref,
               o_ref):
    # Matmul operands are bf16 (or f32) for MXU rate; accumulation, bias add
    # and ReLU are always f32 (preferred_element_type + f32 biases).
    compute_dtype = w1_ref.dtype

    x = x_ref[...]                                               # [TB, K_pad]

    h = jnp.dot(x, w1_ref[...], preferred_element_type=jnp.float32) + b1_ref[...]
    h = jnp.maximum(h, 0.0).astype(compute_dtype)                # [TB, 128]

    h = jnp.dot(h, w2_ref[...], preferred_element_type=jnp.float32) + b2_ref[...]
    h = jnp.maximum(h, 0.0).astype(compute_dtype)                # [TB, 256]

    h = jnp.dot(h, w3_ref[...], preferred_element_type=jnp.float32) + b3_ref[...]
    h = jnp.maximum(h, 0.0).astype(compute_dtype)                # [TB, 128]

    out = jnp.dot(h, w4_ref[...], preferred_element_type=jnp.float32) + b4_ref[...]
    o_ref[...] = out.astype(o_ref.dtype)                         # [TB, A_pad] lane-dense


# --------------------------------------------------------------------------
# Parameter init (matches PyTorch nn.Linear default U[-1/sqrt(fan_in), ...]),
# weights stored [in, out] so the kernel computes x @ W + b.
# --------------------------------------------------------------------------
def init_dqn_params(key, state_dim, action_dim):
    dims = [(state_dim, _H1), (_H1, _H2), (_H2, _H3), (_H3, action_dim)]
    params = {}
    for idx, (fan_in, fan_out) in enumerate(dims, start=1):
        key, kw, kb = jax.random.split(key, 3)
        bound = 1.0 / jnp.sqrt(jnp.float32(fan_in))
        params[f"w{idx}"] = jax.random.uniform(
            kw, (fan_in, fan_out), jnp.float32, minval=-bound, maxval=bound)
        params[f"b{idx}"] = jax.random.uniform(
            kb, (1, fan_out), jnp.float32, minval=-bound, maxval=bound)
    return params


def pack_dqn_params(params, *, compute_dtype=jnp.bfloat16):
    """Pad to lane-dense shapes and cast matmul operands. Do this ONCE."""
    state_dim = params["w1"].shape[0]
    action_dim = params["w4"].shape[1]
    k_pad = _round_up(state_dim, LANE)
    a_pad = _round_up(action_dim, LANE)

    w1 = jnp.zeros((k_pad, _H1), jnp.float32).at[:state_dim, :].set(params["w1"])
    w4 = jnp.zeros((_H3, a_pad), jnp.float32).at[:, :action_dim].set(params["w4"])
    b4 = jnp.zeros((1, a_pad), jnp.float32).at[:, :action_dim].set(params["b4"])

    return {
        "w1": w1.astype(compute_dtype),
        "b1": params["b1"].astype(jnp.float32),
        "w2": params["w2"].astype(compute_dtype),
        "b2": params["b2"].astype(jnp.float32),
        "w3": params["w3"].astype(compute_dtype),
        "b3": params["b3"].astype(jnp.float32),
        "w4": w4.astype(compute_dtype),
        "b4": b4,  # f32, lane-padded
    }


# --------------------------------------------------------------------------
# Wrapper: batch grid + constant-index weight specs + lane-dense output.
# --------------------------------------------------------------------------
def dqn_forward(x, packed, *, action_dim, block_b=512):
    B, state_dim = x.shape
    k_pad = packed["w1"].shape[0]
    a_pad = packed["w4"].shape[1]
    compute_dtype = packed["w1"].dtype

    # Batch tile: multiple of 8 sublanes, capped at block_b (512 keeps the
    # per-step ~0.35us overhead negligible; a 512x256 f32 activation is 0.5 MiB
    # so VMEM stays far below the scoped limit even with double-buffering).
    tb = _round_up(min(block_b, max(B, 8)), 8)
    b_pad = _round_up(B, tb)

    # Zero-pad batch rows + feature (K) lanes, cast to matmul operand dtype.
    x_p = jnp.zeros((b_pad, k_pad), compute_dtype)
    x_p = x_p.at[:B, :state_dim].set(x.astype(compute_dtype))

    weight_names = ("w1", "b1", "w2", "b2", "w3", "b3", "w4", "b4")
    weight_specs = [
        pl.BlockSpec(packed[name].shape, lambda i: (0, 0))  # VMEM-resident
        for name in weight_names
    ]

    out_p = pl.pallas_call(
        dqn_kernel,
        out_shape=jax.ShapeDtypeStruct((b_pad, a_pad), jnp.float32),
        grid=(b_pad // tb,),
        in_specs=[pl.BlockSpec((tb, k_pad), lambda i: (i, 0))] + weight_specs,
        out_specs=pl.BlockSpec((tb, a_pad), lambda i: (i, 0)),
        compiler_params=pltpu.CompilerParams(
            dimension_semantics=("parallel",)),   # megacore sharding on v7x
    )(x_p, *(packed[name] for name in weight_names))

    # Slice padding off outside the kernel (the in-kernel store stays lane-dense).
    # TODO(synk): for pure act() paths, fuse jnp.argmax into the kernel epilogue
    # to skip the Q-value HBM round trip.
    return out_p[:B, :action_dim]


# --------------------------------------------------------------------------
# References for correctness checks.
# --------------------------------------------------------------------------
def dqn_ref(x, params):
    """Pure f32 reference (matches the PyTorch module exactly)."""
    h = jnp.maximum(x @ params["w1"] + params["b1"], 0.0)
    h = jnp.maximum(h @ params["w2"] + params["b2"], 0.0)
    h = jnp.maximum(h @ params["w3"] + params["b3"], 0.0)
    return h @ params["w4"] + params["b4"]


def dqn_ref_matched(x, params, compute_dtype):
    """Reference with the same operand precision as the kernel (bf16 in, f32 acc)."""
    def lin(h, w, b):
        return jnp.dot(h.astype(compute_dtype), w.astype(compute_dtype),
                       preferred_element_type=jnp.float32) + b
    h = jnp.maximum(lin(x, params["w1"], params["b1"]), 0.0)
    h = jnp.maximum(lin(h, params["w2"], params["b2"]), 0.0)
    h = jnp.maximum(lin(h, params["w3"], params["b3"]), 0.0)
    return lin(h, params["w4"], params["b4"])


if __name__ == "__main__":
    state_dim = 16
    action_dim = 4
    batch = 200        # deliberately not a multiple of the batch tile

    key = jax.random.PRNGKey(0)
    key, kx = jax.random.split(key)
    x = jax.random.normal(kx, (batch, state_dim), jnp.float32)
    params = init_dqn_params(key, state_dim, action_dim)

    compute_dtype = jnp.bfloat16          # set jnp.float32 to disable bf16 path
    packed = pack_dqn_params(params, compute_dtype=compute_dtype)

    # block_b=128 -> padded batch 256 -> 2 grid steps (exercises grid + padding).
    out = dqn_forward(x, packed, action_dim=action_dim, block_b=128)
    out = jax.block_until_ready(out)
    assert out.shape == (batch, action_dim)

    # Tight check vs a precision-matched reference, loose check vs pure f32.
    ref_m = dqn_ref_matched(x, params, compute_dtype)
    ref_f = dqn_ref(x, params)
    assert jnp.allclose(out, ref_m, atol=1e-3, rtol=1e-3), "mismatch vs matched-precision reference"
    assert jnp.allclose(out, ref_f, atol=5e-2, rtol=5e-2), "mismatch vs f32 reference"

    # Also sanity-check a tiny batch (single grid step, heavy padding).
    out_small = dqn_forward(x[:3], packed, action_dim=action_dim)
    out_small = jax.block_until_ready(out_small)
    assert out_small.shape == (3, action_dim)
    assert jnp.allclose(out_small, ref_m[:3], atol=1e-3, rtol=1e-3)

    print("KERNEL_OK")
</pallas_src>

<mosaic_0001>
module attributes {stable_mosaic.version = 11 : i64} {
  func.func @dqn_kernel(%arg0: i32, %arg1: memref<128x128xbf16, #tpu.memory_space<vmem>>, %arg2: memref<128x128xbf16, #tpu.memory_space<vmem>>, %arg3: memref<1x128xf32, #tpu.memory_space<vmem>>, %arg4: memref<128x256xbf16, #tpu.memory_space<vmem>>, %arg5: memref<1x256xf32, #tpu.memory_space<vmem>>, %arg6: memref<256x128xbf16, #tpu.memory_space<vmem>>, %arg7: memref<1x128xf32, #tpu.memory_space<vmem>>, %arg8: memref<128x128xbf16, #tpu.memory_space<vmem>>, %arg9: memref<1x128xf32, #tpu.memory_space<vmem>>, %arg10: memref<128x128xf32, #tpu.memory_space<vmem>>) attributes {dimension_semantics = [#tpu.dimension_semantics<parallel>], iteration_bounds = array<i64: 2>, scalar_prefetch = 0 : i64, scratch_operands = 0 : i64, tpu.core_type = #tpu.core_type<tc>, window_params = [{transform_indices = @transform_0, window_bounds = array<i64: 128, 128>}, {pipeline_mode = #tpu.pipeline_mode<synchronous>, transform_indices = @transform_1, window_bounds = array<i64: 128, 128>}, {pipeline_mode = #tpu.pipeline_mode<synchronous>, transform_indices = @transform_2, window_bounds = array<i64: 1, 128>}, {pipeline_mode = #tpu.pipeline_mode<synchronous>, transform_indices = @transform_3, window_bounds = array<i64: 128, 256>}, {pipeline_mode = #tpu.pipeline_mode<synchronous>, transform_indices = @transform_4, window_bounds = array<i64: 1, 256>}, {pipeline_mode = #tpu.pipeline_mode<synchronous>, transform_indices = @transform_5, window_bounds = array<i64: 256, 128>}, {pipeline_mode = #tpu.pipeline_mode<synchronous>, transform_indices = @transform_6, window_bounds = array<i64: 1, 128>}, {pipeline_mode = #tpu.pipeline_mode<synchronous>, transform_indices = @transform_7, window_bounds = array<i64: 128, 128>}, {pipeline_mode = #tpu.pipeline_mode<synchronous>, transform_indices = @transform_8, window_bounds = array<i64: 1, 128>}, {transform_indices = @transform_9, window_bounds = array<i64: 128, 128>}]} {
    %c0 = arith.constant 0 : index
    %c0_0 = arith.constant 0 : index
    %0 = vector.load %arg1[%c0, %c0_0] : memref<128x128xbf16, #tpu.memory_space<vmem>>, vector<128x128xbf16>
    %c0_1 = arith.constant 0 : index
    %c0_2 = arith.constant 0 : index
    %1 = vector.load %arg2[%c0_1, %c0_2] : memref<128x128xbf16, #tpu.memory_space<vmem>>, vector<128x128xbf16>
    %cst = arith.constant dense<0.000000e+00> : vector<128x128xf32>
    %2 = tpu.matmul %0, %1, %cst {dimension_numbers = #tpu.dot_dimension_numbers<[1], [0], [0], [1], [0, 0, 1, 1], [], []>} : vector<128x128xbf16>, vector<128x128xbf16>, vector<128x128xf32> -> vector<128x128xf32>
    %c0_3 = arith.constant 0 : index
    %c0_4 = arith.constant 0 : index
    %3 = vector.load %arg3[%c0_3, %c0_4] : memref<1x128xf32, #tpu.memory_space<vmem>>, vector<1x128xf32>
    %4 = vector.broadcast %3 : vector<1x128xf32> to vector<128x128xf32>
    %5 = arith.addf %2, %4 : vector<128x128xf32>
    %cst_5 = arith.constant 0.000000e+00 : f32
    %6 = vector.broadcast %cst_5 : f32 to vector<128x128xf32>
    %7 = arith.maximumf %5, %6 : vector<128x128xf32>
    %8 = arith.truncf %7 : vector<128x128xf32> to vector<128x128xbf16>
    %c0_6 = arith.constant 0 : index
    %c0_7 = arith.constant 0 : index
    %9 = vector.load %arg4[%c0_6, %c0_7] : memref<128x256xbf16, #tpu.memory_space<vmem>>, vector<128x256xbf16>
    %cst_8 = arith.constant dense<0.000000e+00> : vector<128x256xf32>
    %10 = tpu.matmul %8, %9, %cst_8 {dimension_numbers = #tpu.dot_dimension_numbers<[1], [0], [0], [1], [0, 0, 1, 1], [], []>} : vector<128x128xbf16>, vector<128x256xbf16>, vector<128x256xf32> -> vector<128x256xf32>
    %c0_9 = arith.constant 0 : index
    %c0_10 = arith.constant 0 : index
    %11 = vector.load %arg5[%c0_9, %c0_10] : memref<1x256xf32, #tpu.memory_space<vmem>>, vector<1x256xf32>
    %12 = vector.broadcast %11 : vector<1x256xf32> to vector<128x256xf32>
    %13 = arith.addf %10, %12 : vector<128x256xf32>
    %cst_11 = arith.constant 0.000000e+00 : f32
    %14 = vector.broadcast %cst_11 : f32 to vector<128x256xf32>
    %15 = arith.maximumf %13, %14 : vector<128x256xf32>
    %16 = arith.truncf %15 : vector<128x256xf32> to vector<128x256xbf16>
    %c0_12 = arith.constant 0 : index
    %c0_13 = arith.constant 0 : index
    %17 = vector.load %arg6[%c0_12, %c0_13] : memref<256x128xbf16, #tpu.memory_space<vmem>>, vector<256x128xbf16>
    %cst_14 = arith.constant dense<0.000000e+00> : vector<128x128xf32>
    %18 = tpu.matmul %16, %17, %cst_14 {dimension_numbers = #tpu.dot_dimension_numbers<[1], [0], [0], [1], [0, 0, 1, 1], [], []>} : vector<128x256xbf16>, vector<256x128xbf16>, vector<128x128xf32> -> vector<128x128xf32>
    %c0_15 = arith.constant 0 : index
    %c0_16 = arith.constant 0 : index
    %19 = vector.load %arg7[%c0_15, %c0_16] : memref<1x128xf32, #tpu.memory_space<vmem>>, vector<1x128xf32>
    %20 = vector.broadcast %19 : vector<1x128xf32> to vector<128x128xf32>
    %21 = arith.addf %18, %20 : vector<128x128xf32>
    %cst_17 = arith.constant 0.000000e+00 : f32
    %22 = vector.broadcast %cst_17 : f32 to vector<128x128xf32>
    %23 = arith.maximumf %21, %22 : vector<128x128xf32>
    %24 = arith.truncf %23 : vector<128x128xf32> to vector<128x128xbf16>
    %c0_18 = arith.constant 0 : index
    %c0_19 = arith.constant 0 : index
    %25 = vector.load %arg8[%c0_18, %c0_19] : memref<128x128xbf16, #tpu.memory_space<vmem>>, vector<128x128xbf16>
    %cst_20 = arith.constant dense<0.000000e+00> : vector<128x128xf32>
    %26 = tpu.matmul %24, %25, %cst_20 {dimension_numbers = #tpu.dot_dimension_numbers<[1], [0], [0], [1], [0, 0, 1, 1], [], []>} : vector<128x128xbf16>, vector<128x128xbf16>, vector<128x128xf32> -> vector<128x128xf32>
    %c0_21 = arith.constant 0 : index
    %c0_22 = arith.constant 0 : index
    %27 = vector.load %arg9[%c0_21, %c0_22] : memref<1x128xf32, #tpu.memory_space<vmem>>, vector<1x128xf32>
    %28 = vector.broadcast %27 : vector<1x128xf32> to vector<128x128xf32>
    %29 = arith.addf %26, %28 : vector<128x128xf32>
    %c0_23 = arith.constant 0 : index
    %c0_24 = arith.constant 0 : index
    %30 = vector.load %arg10[%c0_23, %c0_24] : memref<128x128xf32, #tpu.memory_space<vmem>>, vector<128x128xf32>
    tpu.vector_store %arg10[%c0_23, %c0_24], %29 {strides = array<i32>} : memref<128x128xf32, #tpu.memory_space<vmem>>, vector<128x128xf32>,
    return
  }
  func.func @transform_0(%arg0: i32) -> (i32, i32) {
    %c0_i32 = arith.constant 0 : i32
    %c0_i32_0 = arith.constant 0 : i32
    return %arg0, %c0_i32 : i32, i32
  }
  func.func @transform_1(%arg0: i32) -> (i32, i32) {
    %c0_i32 = arith.constant 0 : i32
    %c0_i32_0 = arith.constant 0 : i32
    %c0_i32_1 = arith.constant 0 : i32
    return %c0_i32, %c0_i32_0 : i32, i32
  }
  func.func @transform_2(%arg0: i32) -> (i32, i32) {
    %c0_i32 = arith.constant 0 : i32
    %c0_i32_0 = arith.constant 0 : i32
    %c0_i32_1 = arith.constant 0 : i32
    return %c0_i32, %c0_i32_0 : i32, i32
  }
  func.func @transform_3(%arg0: i32) -> (i32, i32) {
    %c0_i32 = arith.constant 0 : i32
    %c0_i32_0 = arith.constant 0 : i32
    %c0_i32_1 = arith.constant 0 : i32
    return %c0_i32, %c0_i32_0 : i32, i32
  }
  func.func @transform_4(%arg0: i32) -> (i32, i32) {
    %c0_i32 = arith.constant 0 : i32
    %c0_i32_0 = arith.constant 0 : i32
    %c0_i32_1 = arith.constant 0 : i32
    return %c0_i32, %c0_i32_0 : i32, i32
  }
  func.func @transform_5(%arg0: i32) -> (i32, i32) {
    %c0_i32 = arith.constant 0 : i32
    %c0_i32_0 = arith.constant 0 : i32
    %c0_i32_1 = arith.constant 0 : i32
    return %c0_i32, %c0_i32_0 : i32, i32
  }
  func.func @transform_6(%arg0: i32) -> (i32, i32) {
    %c0_i32 = arith.constant 0 : i32
    %c0_i32_0 = arith.constant 0 : i32
    %c0_i32_1 = arith.constant 0 : i32
    return %c0_i32, %c0_i32_0 : i32, i32
  }
  func.func @transform_7(%arg0: i32) -> (i32, i32) {
    %c0_i32 = arith.constant 0 : i32
    %c0_i32_0 = arith.constant 0 : i32
    %c0_i32_1 = arith.constant 0 : i32
    return %c0_i32, %c0_i32_0 : i32, i32
  }
  func.func @transform_8(%arg0: i32) -> (i32, i32) {
    %c0_i32 = arith.constant 0 : i32
    %c0_i32_0 = arith.constant 0 : i32
    %c0_i32_1 = arith.constant 0 : i32
    return %c0_i32, %c0_i32_0 : i32, i32
  }
  func.func @transform_9(%arg0: i32) -> (i32, i32) {
    %c0_i32 = arith.constant 0 : i32
    %c0_i32_0 = arith.constant 0 : i32
    return %arg0, %c0_i32 : i32, i32
  }
}

</mosaic_0001>

<bundles_post_ra>
// kernel: tpu_custom_call.1
= control target key start
LH: loop header
LB: loop body
LE: loop exit
PB: predicated region body
PF: predicated region fallthrough
CT: control target
= control target key end

     0   :  { %s2577_s0 = inlined_call_operand.hbm [shape: bf16[256,128], index: 0, kind: input, shape index: {}]   ;;  %s2578_s1 = inlined_call_operand.hbm [shape: bf16[128,128], index: 1, kind: input, shape index: {}]   ;;  %s2579_s2 = inlined_call_operand.vmem [shape: f32[1,128], index: 2, kind: input, shape index: {}]   ;;  %s2580_s3 = inlined_call_operand.hbm [shape: bf16[128,256], index: 3, kind: input, shape index: {}]   ;;  %s2581_s4 = inlined_call_operand.vmem [shape: f32[1,256], index: 4, kind: input, shape index: {}]   ;;  %s2582_s5 = inlined_call_operand.hbm [shape: bf16[256,128], index: 5, kind: input, shape index: {}]   ;;  %s2583_s6 = inlined_call_operand.vmem [shape: f32[1,128], index: 6, kind: input, shape index: {}]   ;;  %s2584_s7 = inlined_call_operand.hbm [shape: bf16[128,128], index: 7, kind: input, shape index: {}]   ;;  %s2585_s8 = inlined_call_operand.vmem [shape: f32[1,128], index: 8, kind: input, shape index: {}]   ;;  %s2586_s9 = inlined_call_operand.hbm [shape: f32[256,128], index: 9, kind: output, shape index: {}]  }
   0x1   :  { %2597 = sst [smem:[#allocation18_spill]] %s2586_s9 }
   0x2   :  { %14 = vsyncpa [#allocation3], 0 }
   0x3   :  { %16 = vsyncpa [#allocation3 + $0x1], 0 }
   0x4   :  { %17 = vsyncpa [#allocation6], 0 }
   0x5   :  { %18 = vsyncpa [#allocation9], 0 }
   0x6   :  { %19 = vsyncpa [#allocation4], 0 }
   0x7   :  { %21 = vsyncpa [#allocation4 + $0x1], 0  ;;  %s2184_s30 = smov 0   ;;  %s2186_s10 = smov 0  }
   0x8   :  { %s2188_s11 = smov 0   ;;  %s2190_s12 = smov 0  }
   0x9 LB: > { %2598 = sst [smem:[#allocation16_spill]] %s2107_s30  ;;  %s2205_s13 = sadd.s32 4294967295, %s2119_s12   ;;  %s2119_s12 = sphi %s2190_s12, %s2624_s12   ;;  %s2115_s11 = sphi %s2188_s11, %s2623_s11   ;;  %s2111_s10 = sphi %s2186_s10, %s2622_s10   ;;  %s2107_s30 = sphi %s2184_s30, %s2621_s30  }
   0xa   : > { %s1502_s14 = sadd.s32 4294967294, %s2119_s12   ;;  %p47_p0 = scmp.ne.s32.totalorder %s2111_s10, %s2107_s30 }
   0xb   : > { %p2587_p1 = scmp.eq.s32.totalorder %s2205_s13, 0  ;;  %p245_p3 = scmp.eq.s32.totalorder %s1502_s14, 1 }
   0xc   : > { %p1503_p5 = scmp.ge.s32.totalorder %s2119_s12, 1  ;;  %p252_p7 = scmp.lt.s32.totalorder %s2119_s12, 3 }
   0xd   : > { %p2214_p4 = por %p2587_p1, %p47_p0  ;;  %p2219_p6 = por %p245_p3, %p47_p0 }
   0xe   : > { %p2224_p8 = pnand %p1503_p5, %p252_p7  ;;  %s2121_s18 = smov [#allocation5]  }
   0xf   : > { %s2599_s15 = scalar_select %p2214_p4, 1, 0 }
  0x10   : > { %s2600_s16 = scalar_select %p2219_p6, 1, 0 }
  0x11   : > { %s2602_s17 = scalar_select %p2224_p8, 1, 0 }
  0x12   : > { %2601 = sst [smem:[#allocation17_spill]] %s2600_s16  ;;  %s264_s19 = sshll.u32 %s2121_s18, 4  ;;  %s2228_s19 = int_to_ptr.vmem [resolvable:$true] %s264_s19 }
  0x13   : > { %p1765_p9 = pneg %p2224_p8  ;;  %s2122_s21 = smov [#allocation8]  }
  0x14   : > { %s296_s22 = sshll.u32 %s2122_s21, 4  ;;  %s2123_s23 = smov [#allocation7]   ;;  %s2239_s22 = int_to_ptr.vmem [resolvable:$true] %s296_s22 }
  0x15   : > { %p2235_p11 = pnand %p1765_p9, %p2587_p1  ;;  %s2241_s24 = sshll.u32 %s2123_s23, 4  ;;  %s281_s24 = int_to_ptr.vmem [resolvable:$true] %s2241_s24 }
  0x16   : > { %s1903_s27 = scalar_lea.hbm %s2578_s1, 1024 }
  0x17   : > { %p1904_p12 = scmp.ne.s32.totalorder %s2578_s1, %s1903_s27  ;;  %p2251_p13 = pneg %p2235_p11 }
  0x18   : > { %p1910_p5 = scmp.lt.u32.totalorder %s1903_s27, %s2578_s1 }
  0x19   : > { %p1906_p0 = pnand %p2251_p13, %p1904_p12 }
  0x1b   : > { %p1907_p3 = pneg %p1906_p0 }
  0x1d   : > { %p1912_p7 = pnand %p1910_p5, %p1907_p3 }
  0x1f   : > { %1915 = shalt.err (!%p1912_p7)
}
  0x20   : > { %s1916_s23 = scalar_lea.vmem %s2228_s19, 1024  ;;  %p1924_p2 = scmp.lt.s32.totalorder %s2228_s19, %s2228_s19 }
  0x21   : > { %p1917_p9 = scmp.ne.s32.totalorder %s2228_s19, %s1916_s23  ;;  %p1925_p6 = scmp.lt.s32.totalorder %s1916_s23, %s1916_s23 }
  0x23   : > { %p1919_p10 = pnand %p1917_p9, %p2251_p13  ;;  %p1926_p12 = por %p1925_p6, %p1924_p2 }
  0x25   : > { %p1920_p1 = pneg %p1919_p10 }
  0x27   : > { %p1927_p0 = pnand %p1926_p12, %p1920_p1 }
  0x29   : > { %1930 = shalt.err (!%p1927_p0)
}
  0x2a   : > { %s2593_s25 = smov 64   ;;  %s2595_s26 = smov 4  }
  0x2b   : > { %1768 = dma.hbm_to_vmem [thread:$0]  (!%p2235_p11), %s2578_s1, 1024, %s2228_s19, [#allocation6], %s2593_s25, %s2593_s25, %s2595_s26  }
  0x2c   : > { %s1931_s21 = scalar_lea.hbm %s2582_s5, 2048 }
  0x2d   : > { %p1932_p1 = scmp.ne.s32.totalorder %s2582_s5, %s1931_s21  ;;  %p1938_p10 = scmp.lt.u32.totalorder %s1931_s21, %s2582_s5 }
  0x2f   : > { %p1934_p2 = pnand %p1932_p1, %p2251_p13 }
  0x31   : > { %p1935_p6 = pneg %p1934_p2 }
  0x33   : > { %p1940_p3 = pnand %p1938_p10, %p1935_p6 }
  0x35   : > { %1943 = shalt.err (!%p1940_p3)
}
  0x36   : > { %s1944_s19 = scalar_lea.vmem %s2239_s22, 2048  ;;  %p1952_p12 = scmp.lt.s32.totalorder %s2239_s22, %s2239_s22 }
  0x37   : > { %p1945_p5 = scmp.ne.s32.totalorder %s2239_s22, %s1944_s19  ;;  %p1953_p0 = scmp.lt.s32.totalorder %s1944_s19, %s1944_s19 }
  0x39   : > { %p1947_p7 = pnand %p1945_p5, %p2251_p13  ;;  %p1954_p1 = por %p1953_p0, %p1952_p12 }
  0x3b   : > { %p1948_p9 = pneg %p1947_p7 }
  0x3d   : > { %p1955_p2 = pnand %p1954_p1, %p1948_p9 }
  0x3f   : > { %1958 = shalt.err (!%p1955_p2)
}
  0x40   : > { %1774 = dma.hbm_to_vmem [thread:$0]  (!%p2235_p11), %s2582_s5, 2048, %s2239_s22, [#allocation9], %s2593_s25, %s2593_s25, %s2595_s26  }
  0x41   : > { %s1959_s28 = scalar_lea.hbm %s2580_s3, 2048 }
  0x42   : > { %p1960_p6 = scmp.ne.s32.totalorder %s2580_s3, %s1959_s28  ;;  %p1966_p5 = scmp.lt.u32.totalorder %s1959_s28, %s2580_s3 }
  0x44   : > { %p1962_p10 = pnand %p1960_p6, %p2251_p13 }
  0x46   : > { %p1963_p3 = pneg %p1962_p10 }
  0x48   : > { %p1968_p7 = pnand %p1966_p5, %p1963_p3 }
  0x4a   : > { %1971 = shalt.err (!%p1968_p7)
}
  0x4b   : > { %s1972_s19 = scalar_lea.vmem %s281_s24, 2048  ;;  %p1980_p1 = scmp.lt.s32.totalorder %s281_s24, %s281_s24 }
  0x4c   : > { %p1973_p9 = scmp.ne.s32.totalorder %s281_s24, %s1972_s19  ;;  %p1981_p2 = scmp.lt.s32.totalorder %s1972_s19, %s1972_s19 }
  0x4e   : > { %p1975_p12 = pnand %p1973_p9, %p2251_p13  ;;  %p1982_p4 = por %p1981_p2, %p1980_p1 }
  0x50   : > { %p1976_p0 = pneg %p1975_p12 }
  0x52   : > { %p1983_p8 = pnand %p1982_p4, %p1976_p0 }
  0x54   : > { %1986 = shalt.err (!%p1983_p8)
}
  0x55   : > { %s2126_s22 = smov 128   ;;  %s2127_s9 = smov 8  }
  0x56   : > { %1771 = dma.hbm_to_vmem [thread:$0]  (!%p2235_p11), %s2580_s3, 2048, %s281_s24, [#allocation6], %s2126_s22, %s2126_s22, %s2127_s9  }
  0x57   : > { %s2128_s27 = smov [#allocation10]   ;;  %s1987_s21 = scalar_lea.hbm %s2584_s7, 1024 }
  0x58   : > { %s312_s28 = sshll.u32 %s2128_s27, 4  ;;  %p1988_p4 = scmp.ne.s32.totalorder %s2584_s7, %s1987_s21  ;;  %s313_s28 = int_to_ptr.vmem [resolvable:$true] %s312_s28 }
  0x59   : > { %p1994_p10 = scmp.lt.u32.totalorder %s1987_s21, %s2584_s7 }
  0x5a   : > { %p1990_p8 = pnand %p1988_p4, %p2251_p13 }
  0x5c   : > { %p1991_p6 = pneg %p1990_p8 }
  0x5e   : > { %p1996_p3 = pnand %p1994_p10, %p1991_p6 }
  0x60   : > { %1999 = shalt.err (!%p1996_p3)
}
  0x61   : > { %s2000_s24 = scalar_lea.vmem %s313_s28, 1024  ;;  %p2008_p12 = scmp.lt.s32.totalorder %s313_s28, %s313_s28 }
  0x62   : > { %p2001_p5 = scmp.ne.s32.totalorder %s313_s28, %s2000_s24  ;;  %p2009_p0 = scmp.lt.s32.totalorder %s2000_s24, %s2000_s24 }
  0x64   : > { %p2003_p7 = pnand %p2001_p5, %p2251_p13  ;;  %p2010_p1 = por %p2009_p0, %p2008_p12 }
  0x66   : > { %p2004_p9 = pneg %p2003_p7 }
  0x68   : > { %p2011_p2 = pnand %p2010_p1, %p2004_p9 }
  0x6a   : > { %2014 = shalt.err (!%p2011_p2)
}
  0x6b   : > { %s2605_s22 = smov 4   ;;  %s2606_s9 = smov 64  }
  0x6c   : > { %1777 = dma.hbm_to_vmem [thread:$0]  (!%p2235_p11), %s2584_s7, 1024, %s313_s28, [#allocation9], %s2606_s9, %s2606_s9, %s2605_s22  }
  0x6d   : > { %s2342_s14 = sadd.s32 1, %s2119_s12   ;;  %s34_s20 = sadd.s32 1, %s2115_s11 }
  0x6e   : > { %s31_s30 = ssub.s32 %s2119_s12, %s2342_s14  ;;  %p41_p13 = scmp.ne.s32.totalorder %s2115_s11, %s2111_s10 }
  0x6f   : > { %p32_p4 = scmp.eq.s32.totalorder %s31_s30, 0  ;;  %p42_p8 = scmp.eq.s32.totalorder %s2119_s12, 0 }
  0x70   : > { %p2607_p6 = scmp.eq.s32.totalorder %s2205_s13, 1  ;;  %p1790_p3 = scmp.lt.s32.totalorder %s2119_s12, 2 }
  0x71   : > { %s2358_s27 = scalar_select %p32_p4, %s2115_s11, %s34_s20  }
  0x72   : > { %p2352_p10 = por %p2607_p6, %p41_p13  ;;  %p43_p5 = por %p42_p8, %p41_p13 }
  0x73   : > { %s329_s29 = sand.u32 1, %s2115_s11   ;;  %s1583_s28 = sshll.u32 %s2119_s12, 10 }
  0x74   : > { %s1509_s18 = sshll.u32 %s329_s29, 6  ;;  %s2365_s19 = scalar_lea.hbm %s2577_s0, %s1583_s28 }
  0x75   : > { %s333_s24 = scalar_lea.vmem [#allocation2], %s1509_s18  ;;  %p2369_p11 = pnand %p1790_p3, %p43_p5 }
  0x76   : > { %s340_s25 = sshll.u32 %s333_s24, 4  ;;  %s2373_s20 = scalar_lea.sflag [#allocation3], %s329_s29  ;;  %s2367_s25 = int_to_ptr.vmem [resolvable:$true] %s340_s25 }
  0x77   : > { %s2015_s30 = scalar_lea.hbm %s2365_s19, 1024  ;;  %p2017_p9 = pneg %p2369_p11 }
  0x78   : > { %p2016_p7 = scmp.ne.s32.totalorder %s2365_s19, %s2015_s30  ;;  %s2020_s21 = scalar_lea.hbm %s2577_s0, 2048 }
  0x79   : > { %p2021_p1 = scmp.lt.u32.totalorder %s2365_s19, %s2577_s0  ;;  %p2022_p2 = scmp.lt.u32.totalorder %s2020_s21, %s2015_s30 }
  0x7a   : > { %p2018_p12 = pnand %p2017_p9, %p2016_p7  ;;  %p2024_p4 = scmp.lt.u32.totalorder %s2015_s30, %s2365_s19 }
  0x7b   : > { %p2023_p13 = por %p2022_p2, %p2021_p1 }
  0x7c   : > { %p2019_p0 = pneg %p2018_p12 }
  0x7d   : > { %p2025_p8 = por %p2024_p4, %p2023_p13 }
  0x7f   : > { %p2026_p6 = pnand %p2025_p8, %p2019_p0 }
  0x81   : > { %2029 = shalt.err (!%p2026_p6)
}
  0x82   : > { %s2030_s29 = scalar_lea.vmem %s2367_s25, 1024  ;;  %s2129_s18 = smov [#allocation2]  }
  0x83   : > { %p2031_p3 = scmp.ne.s32.totalorder %s2367_s25, %s2030_s29  ;;  %s2035_s28 = sshll.u32 %s2129_s18, 4  ;;  %s2036_s28 = int_to_ptr.vmem [resolvable:$false] %s2035_s28 }
  0x84   : > { %s2037_s23 = scalar_lea.vmem %s2036_s28, 2048  ;;  %p2038_p12 = scmp.lt.s32.totalorder %s2367_s25, %s2036_s28 }
  0x85   : > { %p2033_p5 = pnand %p2031_p3, %p2017_p9  ;;  %p2039_p1 = scmp.lt.s32.totalorder %s2037_s23, %s2030_s29 }
  0x87   : > { %p2034_p7 = pneg %p2033_p5  ;;  %p2040_p2 = por %p2039_p1, %p2038_p12 }
  0x89   : > { %p2041_p13 = pnand %p2040_p2, %p2034_p7 }
  0x8b   : > { %2044 = shalt.err (!%p2041_p13)
}
  0x8c   : > { %1781 = dma.hbm_to_vmem [thread:$0]  (!%p2369_p11), %s2365_s19, 1024, %s2367_s25, %s2373_s20, %s2606_s9, %s2606_s9, %s2605_s22  }
  0x8d   : > { %p2610_p9 = scmp.ne.s32.totalorder %s2602_s17, 0 }
  0x8e   : > { %s2407_s30 = sand.u32 (!%p2610_p9), 1, %s2111_s10   ;;  %p2611_p0 = scmp.ne.s32.totalorder (!%p2610_p9), %s2599_s15, 0 }
  0x8f   : > { %352 = sbr.rel (%p2610_p9) target bundleno = 1145 (0x479), region = 56  ;;  %s1513_s21 = sshll.u32 (!%p2610_p9), %s2407_s30, 6 }
  0x90   : > { %s355_s24 = scalar_lea.sflag (!%p2610_p9), [#allocation3], %s2407_s30  ;;  %s2411_s29 = scalar_lea.vmem (!%p2610_p9), [#allocation2], %s1513_s21 }
  0x96   : > { %2090 = dma.done.wait (%p2611_p0), %s355_s24, 1024  }
  0x97   : > { %2092 = vsyncadd (%p2611_p0), %s355_s24, 4294966272  ;;  %p2612_p11 = scmp.eq.s32.totalorder %s2205_s13, 0 }
  0x99   : > { %2094 = dma.done.wait (%p2612_p11), [#allocation6], 3072   ;;  %p2613_p4 = pmov %p2612_p11 }
  0x9b   : > { %2096 = vsyncadd (%p2613_p4), [#allocation6], 4294964224  ;;  %p2614_p8 = pmov %p2613_p4 }
  0x9c   : > { %p2615_p6 = pmov %p2613_p4 }
  0x9d   : > { %2098 = dma.done.wait (%p2614_p8), [#allocation9], 3072  }
  0x9e   : > { %2100 = vsyncadd (%p2615_p6), [#allocation9], 4294964224  ;;  %v1839_v0 = vld [vmem:[#allocation5] sm:$0xff]   ;;  %v1840_v1 = vld [vmem:[#allocation5 + $0x8] sm:$0xff]   ;;  %v2130_v32 = vmov 0   ;;  %s1518_s26 = sshll.u32 %s2407_s30, 7 }
  0x9f   : > { %1681 = vmatprep.subr.bf16.mxu0 %v1839_v0  ;;  %v1841_v2 = vld [vmem:[#allocation5 + $0x10] sm:$0xff]   ;;  %v1842_v3 = vld [vmem:[#allocation5 + $0x18] sm:$0xff]   ;;  %v1847_v4 = vld [vmem:[%s2411_s29] sm:$0xff]   ;;  %808 = vmatprep.mubr.bf16.mxu1 %v2130_v32  ;;  %s2508_s28 = scalar_lea.vmem [#allocation11], %s1518_s26  ;;  %s1584_s23 = sshll.u32 %s2205_s13, 11 }
  0xa0   : > { %1682 = vmatpush3.bf16.msra.mxu0 %v1839_v0  ;;  %1697 = vmatprep.mubr.bf16.mxu0 %v1847_v4  ;;  %v1843_v5 = vld [vmem:[#allocation5 + $0x20] sm:$0xff]   ;;  %v1844_v6 = vld [vmem:[#allocation5 + $0x28] sm:$0xff]   ;;  %v1858_v9 = vld [vmem:[#allocation7 + $0x14] ss:$8 sps:$4 sm:$0xff]   ;;  %s1391_s21 = sshll.u32 %s2508_s28, 4  ;;  %s2616_s15 = sld [smem:[#allocation18_spill]]  ;;  %s2530_s21 = int_to_ptr.vmem [resolvable:$true] %s1391_s21 }
  0xa1   : > { %1683 = vmatprep.subr.bf16.mxu0 %v1840_v1  ;;  %v1855_v7 = vld [vmem:[#allocation7 + $0x4] ss:$8 sps:$4 sm:$0xff]   ;;  %v1857_v8 = vld [vmem:[#allocation7] ss:$8 sps:$4 sm:$0xff]   ;;  %v1845_v10 = vld [vmem:[#allocation5 + $0x30] sm:$0xff]   ;;  %s1378_s13 = scalar_lea.sflag [#allocation4], %s2407_s30 }
  0xa2   : > { %776 = vmatprep.subr.bf16.mxu1 %v1855_v7  ;;  %v1860_v11 = vld [vmem:[#allocation7 + $0x10] ss:$8 sps:$4 sm:$0xff]   ;;  %v1861_v12 = vld [vmem:[#allocation7 + $0x24] ss:$8 sps:$4 sm:$0xff]   ;;  %v1863_v14 = vld [vmem:[#allocation7 + $0x20] ss:$8 sps:$4 sm:$0xff]  }
  0xa3   : > { %777 = vmatpush1.bf16.msra.mxu1 %v1857_v8  ;;  %v1846_v13 = vld [vmem:[#allocation5 + $0x38] sm:$0xff]   ;;  %v1867_v17 = vld [vmem:[#allocation7 + $0x44] ss:$8 sps:$4 sm:$0xff]   ;;  %v1849_v19 = vld [vmem:[%s2411_s29 + $0x10] sm:$0xff]   ;;  %s2045_s22 = scalar_lea.vmem %s2530_s21, 2048  ;;  %s2131_s9 = smov [#allocation11]  }
  0xa4   : > { %1684 = vmatpush3.bf16.msra.mxu0 %v1840_v1  ;;  %778 = vmatprep.subr.bf16.mxu1 %v1858_v9  ;;  %v1864_v15 = vld [vmem:[#allocation7 + $0x34] ss:$8 sps:$4 sm:$0xff]   ;;  %v1866_v16 = vld [vmem:[#allocation7 + $0x30] ss:$8 sps:$4 sm:$0xff]   ;;  %v1848_v18 = vld [vmem:[%s2411_s29 + $0x8] sm:$0xff]   ;;  %p2046_p3 = scmp.ne.s32.totalorder %s2530_s21, %s2045_s22  ;;  %s2049_s19 = sshll.u32 %s2131_s9, 4  ;;  %s2050_s19 = int_to_ptr.vmem [resolvable:$false] %s2049_s19 }
  0xa5   : > { %1685 = vmatprep.subr.bf16.mxu0 %v1841_v2  ;;  %v1869_v20 = vld [vmem:[#allocation7 + $0x40] ss:$8 sps:$4 sm:$0xff]   ;;  %v1870_v21 = vld [vmem:[#allocation7 + $0x54] ss:$8 sps:$4 sm:$0xff]   ;;  %v1872_v22 = vld [vmem:[#allocation7 + $0x50] ss:$8 sps:$4 sm:$0xff]   ;;  %p2052_p12 = scmp.lt.s32.totalorder %s2530_s21, %s2050_s19 }
  0xa6   : > { %v1850_v23 = vld [vmem:[%s2411_s29 + $0x18] sm:$0xff]   ;;  %v1851_v24 = vld [vmem:[%s2411_s29 + $0x20] sm:$0xff]   ;;  %v1852_v25 = vld [vmem:[%s2411_s29 + $0x28] sm:$0xff]   ;;  %s2528_s17 = scalar_lea.hbm %s2616_s15, %s1584_s23  ;;  %p2047_p5 = pnand %p2046_p3, %p2352_p10 }
  0xa7   : > { %779 = vmatpush1.bf16.msra.mxu1 %v1860_v11  ;;  %v1853_v26 = vld [vmem:[%s2411_s29 + $0x30] sm:$0xff]   ;;  %v1854_v27 = vld [vmem:[%s2411_s29 + $0x38] sm:$0xff]   ;;  %v1873_v28 = vld [vmem:[#allocation7 + $0x64] ss:$8 sps:$4 sm:$0xff]   ;;  %s2051_s25 = scalar_lea.vmem %s2050_s19, 4096 }
  0xa8   : > { %1686 = vmatpush3.bf16.msra.mxu0 %v1841_v2  ;;  %780 = vmatprep.subr.bf16.mxu1 %v1861_v12  ;;  %v1875_v29 = vld [vmem:[#allocation7 + $0x60] ss:$8 sps:$4 sm:$0xff]   ;;  %v1876_v30 = vld [vmem:[#allocation7 + $0x74] ss:$8 sps:$4 sm:$0xff]   ;;  %v1878_v31 = vld [vmem:[#allocation7 + $0x70] ss:$8 sps:$4 sm:$0xff]   ;;  %p2048_p7 = pneg %p2047_p5  ;;  %p2053_p1 = scmp.lt.s32.totalorder %s2051_s25, %s2045_s22 }
  0xa9   : > { %1687 = vmatprep.subr.bf16.mxu0 %v1842_v3  ;;  %v1879_v33 = vld [vmem:[#allocation8 + $0x40] sm:$0xff]   ;;  %v1881_v35 = vld [vmem:[#allocation8 + $0x48] sm:$0xff]   ;;  %v1883_v37 = vld [vmem:[#allocation8 + $0x50] sm:$0xff]  }
  0xaa   : > { %v1880_v34 = vld [vmem:[#allocation8] sm:$0xff]   ;;  %v1882_v36 = vld [vmem:[#allocation8 + $0x8] sm:$0xff]   ;;  %v1884_v38 = vld [vmem:[#allocation8 + $0x10] sm:$0xff]   ;;  %p2054_p2 = por %p2053_p1, %p2052_p12 }
  0xab   : > { %781 = vmatpush1.bf16.msra.mxu1 %v1863_v14  ;;  %v1885_v39 = vld [vmem:[#allocation8 + $0x58] sm:$0xff]   ;;  %v1887_v41 = vld [vmem:[#allocation8 + $0x60] sm:$0xff]   ;;  %v1889_v43 = vld [vmem:[#allocation8 + $0x68] sm:$0xff]  }
  0xac   : > { %1688 = vmatpush3.bf16.msra.mxu0 %v1842_v3  ;;  %782 = vmatprep.subr.bf16.mxu1 %v1864_v15  ;;  %v1886_v40 = vld [vmem:[#allocation8 + $0x18] sm:$0xff]   ;;  %v1888_v42 = vld [vmem:[#allocation8 + $0x20] sm:$0xff]   ;;  %v1890_v44 = vld [vmem:[#allocation8 + $0x28] sm:$0xff]   ;;  %p2055_p13 = pnand %p2054_p2, %p2048_p7 }
  0xad   : > { %1689 = vmatprep.subr.bf16.mxu0 %v1843_v5  ;;  %v1519_v45 = vld [vmem:[%s2579_s2] ss:$0 sm:$0xff] }
  0xaf   : > { %783 = vmatpush1.bf16.msra.mxu1 %v1866_v16 }
  0xb0   : > { %1690 = vmatpush3.bf16.msra.mxu0 %v1843_v5  ;;  %784 = vmatprep.subr.bf16.mxu1 %v1867_v17 }
  0xb1   : > { %1691 = vmatprep.subr.bf16.mxu0 %v1844_v6 }
  0xb3   : > { %785 = vmatpush1.bf16.msra.mxu1 %v1869_v20 }
  0xb4   : > { %1692 = vmatpush3.bf16.msra.mxu0 %v1844_v6  ;;  %786 = vmatprep.subr.bf16.mxu1 %v1870_v21 }
  0xb5   : > { %1693 = vmatprep.subr.bf16.mxu0 %v1845_v10 }
  0xb7   : > { %787 = vmatpush1.bf16.msra.mxu1 %v1872_v22 }
  0xb8   : > { %1694 = vmatpush3.bf16.msra.mxu0 %v1845_v10  ;;  %788 = vmatprep.subr.bf16.mxu1 %v1873_v28 }
  0xb9   : > { %1695 = vmatprep.subr.bf16.mxu0 %v1846_v13 }
  0xbb   : > { %789 = vmatpush1.bf16.msra.mxu1 %v1875_v29 }
  0xbc   : > { %1696 = vmatpush3.bf16.msra.mxu0 %v1846_v13  ;;  %790 = vmatprep.subr.bf16.mxu1 %v1876_v30 }
  0xbd   : > { %1601 = vmatprep.subr.bf16.mxu0 %v1879_v33 }
  0xbf   : > { %1698 = vmatmul.mubr.bf16.vlgmr.msra.gmra.mrb[0].mxu0 %v1848_v18  ;;  %791 = vmatpush1.bf16.msra.mxu1 %v1878_v31 }
  0xc0   : > { %1701 = vmatprep.mubr.bf16.mxu0 %v1849_v19  ;;  %1602 = vmatpush3.bf16.msra.mxu0 %v1880_v34 }
  0xc1   : > { %1603 = vmatprep.subr.bf16.mxu0 %v1881_v35 }
  0xc4   : > { %1604 = vmatpush3.bf16.msra.mxu0 %v1882_v36 }
  0xc5   : > { %1605 = vmatprep.subr.bf16.mxu0 %v1883_v37 }
  0xc7   : > { %1702 = vmatmul.mubr.bf16.gmra.mrb[4].mxu0 %v1850_v23 }
  0xc8   : > { %1705 = vmatprep.mubr.bf16.mxu0 %v1851_v24  ;;  %1606 = vmatpush3.bf16.msra.mxu0 %v1884_v38 }
  0xc9   : > { %1607 = vmatprep.subr.bf16.mxu0 %v1885_v39  ;;  %v1891_v39 = vld [vmem:[#allocation8 + $0x70] sm:$0xff]  }
  0xcc   : > { %1608 = vmatpush3.bf16.msra.mxu0 %v1886_v40  ;;  %v1892_v40 = vld [vmem:[#allocation8 + $0x30] sm:$0xff]  }
  0xcd   : > { %1609 = vmatprep.subr.bf16.mxu0 %v1887_v41  ;;  %v1893_v41 = vld [vmem:[#allocation8 + $0x78] sm:$0xff]  }
  0xcf   : > { %1706 = vmatmul.mubr.bf16.gmra.mrb[8].mxu0 %v1852_v25 }
  0xd0   : > { %1709 = vmatprep.mubr.bf16.mxu0 %v1853_v26  ;;  %1610 = vmatpush3.bf16.msra.mxu0 %v1888_v42  ;;  %v1894_v42 = vld [vmem:[#allocation8 + $0x38] sm:$0xff]  }
  0xd1   : > { %1611 = vmatprep.subr.bf16.mxu0 %v1889_v43  ;;  %v1895_v43 = vld [vmem:[#allocation10] sm:$0xff]  }
  0xd2   : > { %1713 = vmatprep.subr.bf16.mxu1 %v1895_v43 }
  0xd4   : > { %1612 = vmatpush3.bf16.msra.mxu0 %v1890_v44  ;;  %v1896_v44 = vld [vmem:[#allocation10 + $0x8] sm:$0xff]  }
  0xd5   : > { %1613 = vmatprep.subr.bf16.mxu0 %v1891_v39 }
  0xd7   : > { %1710 = vmatmul.mubr.bf16.gmra.mrb[12].mxu0 %v1854_v27 }
  0xd8   : > { %1614 = vmatpush3.bf16.msra.mxu0 %v1892_v40 }
  0xd9   : > { %1615 = vmatprep.subr.bf16.mxu0 %v1893_v41 }
  0xdc   : > { %1616 = vmatpush3.bf16.msra.mxu0 %v1894_v42 }
 0x192   : > { %v1699_v46 = vpop.f32.mrb[0].mxu0 }
 0x193   : > { %v590_v47 = vadd.f32 %v1699_v46, %v1519_v45  ;;  %v581_v48 = vpop.f32.mrb[1].mxu0  ;;  %v686_v46 = vlaneseq }
 0x194   : > { %v582_v49 = vadd.f32 %v1519_v45, %v581_v48  ;;  %v1700_v50 = vpop.f32.mrb[2].mxu0  ;;  %v684_v48 = vld [vmem:[%s2581_s4] sm:$0x3] }
 0x195   : > { %v593_v51 = vadd.f32 %v1700_v50, %v1519_v45  ;;  %v584_v52 = vpop.f32.mrb[3].mxu0  ;;  %v646_v54 = vmax.f32 %v590_v47, 0.0 }
 0x196   : > { %v585_v53 = vadd.f32 %v1519_v45, %v584_v52  ;;  %v644_v56 = vmax.f32 %v582_v49, 0.0 }
 0x197   : > { %v647_v55 = vmax.f32 %v593_v51, 0.0 }
 0x198   : > { %v645_v57 = vmax.f32 %v585_v53, 0.0 }
 0x199   : > { %v661_v58 = vpack.c.bf16 %v647_v55, %v646_v54 }
 0x19a   : > { %v660_v59 = vpack.c.bf16 %v645_v57, %v644_v56  ;;  %v1703_v60 = vpop.f32.mrb[4].mxu0 }
 0x19b   : > { %v606_v61 = vadd.f32 %v1703_v60, %v1519_v45  ;;  %v597_v62 = vpop.f32.mrb[5].mxu0 }
 0x19c   : > { %809 = vmatmul.mubr.bf16.vlgmr.msra.gmra.mrb[0].mxu1 %v660_v59  ;;  %v598_v63 = vadd.f32 %v1519_v45, %v597_v62  ;;  %v1704_v0 = vpop.f32.mrb[6].mxu0 }
 0x19d   : > { %v650_v1 = vmax.f32 %v606_v61, 0.0  ;;  %v609_v2 = vadd.f32 %v1704_v0, %v1519_v45  ;;  %v600_v3 = vpop.f32.mrb[7].mxu0  ;;  %818 = vmatprep.mubr.bf16.mxu1 %v2130_v32  ;;  %1714 = vmatpush3.bf16.msra.mxu1 %v1895_v43 }
 0x19e   : > { %v648_v4 = vmax.f32 %v598_v63, 0.0  ;;  %v601_v5 = vadd.f32 %v1519_v45, %v600_v3  ;;  %1715 = vmatprep.subr.bf16.mxu1 %v1896_v44 }
 0x19f   : > { %v651_v6 = vmax.f32 %v609_v2, 0.0 }
 0x1a0   : > { %v649_v7 = vmax.f32 %v601_v5, 0.0 }
 0x1a1   : > { %v663_v8 = vpack.c.bf16 %v651_v6, %v650_v1  ;;  %1716 = vmatpush3.bf16.msra.mxu1 %v1896_v44 }
 0x1a2   : > { %v662_v9 = vpack.c.bf16 %v649_v7, %v648_v4  ;;  %v1707_v10 = vpop.f32.mrb[8].mxu0 }
 0x1a3   : > { %v622_v11 = vadd.f32 %v1707_v10, %v1519_v45  ;;  %v613_v12 = vpop.f32.mrb[9].mxu0 }
 0x1a4   : > { %819 = vmatmul.mubr.bf16.gmra.mrb[4].mxu1 %v661_v58  ;;  %v614_v13 = vadd.f32 %v1519_v45, %v613_v12  ;;  %v1708_v14 = vpop.f32.mrb[10].mxu0 }
 0x1a5   : > { %828 = vmatprep.mubr.bf16.mxu1 %v2130_v32  ;;  %v654_v15 = vmax.f32 %v622_v11, 0.0  ;;  %v625_v16 = vadd.f32 %v1708_v14, %v1519_v45  ;;  %v616_v17 = vpop.f32.mrb[11].mxu0 }
 0x1a6   : > { %v652_v18 = vmax.f32 %v614_v13, 0.0  ;;  %v617_v19 = vadd.f32 %v1519_v45, %v616_v17 }
 0x1a7   : > { %v655_v20 = vmax.f32 %v625_v16, 0.0 }
 0x1a8   : > { %v653_v21 = vmax.f32 %v617_v19, 0.0 }
 0x1a9   : > { %v665_v22 = vpack.c.bf16 %v655_v20, %v654_v15 }
 0x1aa   : > { %v664_v23 = vpack.c.bf16 %v653_v21, %v652_v18  ;;  %v1711_v24 = vpop.f32.mrb[12].mxu0 }
 0x1ab   : > { %v638_v25 = vadd.f32 %v1711_v24, %v1519_v45  ;;  %v629_v26 = vpop.f32.mrb[13].mxu0 }
 0x1ac   : > { %829 = vmatmul.mubr.bf16.gmra.mrb[8].mxu1 %v662_v9  ;;  %v630_v27 = vadd.f32 %v1519_v45, %v629_v26  ;;  %v1712_v28 = vpop.f32.mrb[14].mxu0 }
 0x1ad   : > { %838 = vmatprep.mubr.bf16.mxu1 %v2130_v32  ;;  %v658_v29 = vmax.f32 %v638_v25, 0.0  ;;  %v641_v30 = vadd.f32 %v1712_v28, %v1519_v45  ;;  %v632_v31 = vpop.f32.mrb[15].mxu0 }
 0x1ae   : > { %v656_v33 = vmax.f32 %v630_v27, 0.0  ;;  %v633_v34 = vadd.f32 %v1519_v45, %v632_v31  ;;  %v1897_v45 = vld [vmem:[#allocation10 + $0x10] sm:$0xff]  }
 0x1af   : > { %v659_v35 = vmax.f32 %v641_v30, 0.0  ;;  %1717 = vmatprep.subr.bf16.mxu1 %v1897_v45 }
 0x1b0   : > { %v657_v36 = vmax.f32 %v633_v34, 0.0  ;;  %1718 = vmatpush3.bf16.msra.mxu1 %v1897_v45 }
 0x1b1   : > { %v667_v37 = vpack.c.bf16 %v659_v35, %v658_v29 }
 0x1b2   : > { %v666_v38 = vpack.c.bf16 %v657_v36, %v656_v33 }
 0x1b4   : > { %839 = vmatmul.mubr.bf16.gmra.mrb[12].mxu1 %v663_v8 }
 0x1b5   : > { %848 = vmatprep.mubr.bf16.mxu1 %v2130_v32 }
 0x1bc   : > { %849 = vmatmul.mubr.bf16.gmra.mrb[16].mxu1 %v664_v23 }
 0x1bd   : > { %858 = vmatprep.mubr.bf16.mxu1 %v2130_v32 }
 0x1c4   : > { %859 = vmatmul.mubr.bf16.gmra.mrb[20].mxu1 %v665_v22 }
 0x1c5   : > { %868 = vmatprep.mubr.bf16.mxu1 %v2130_v32 }
 0x1cc   : > { %869 = vmatmul.mubr.bf16.gmra.mrb[24].mxu1 %v666_v38 }
 0x1cd   : > { %878 = vmatprep.mubr.bf16.mxu1 %v2130_v32  ;;  %v687_v32 = vshrl.u32 %v686_v46, 7 }
 0x1cf   : > { %v688_v47 = vsub.s32 0, %v687_v32  ;;  %v692_v49 = vsub.s32 1, %v687_v32 }
 0x1d1   : > { %v2447_v50 = vrot.slane %v684_v48, %v688_v47  ;;  %v2449_v51 = vrot.slane %v684_v48, %v692_v49 }
 0x1d4   : > { %879 = vmatmul.mubr.bf16.gmra.mrb[28].mxu1 %v667_v37 }
 0x26f   : > { %v810_v52 = vpop.f32.mrb[0].mxu1 }
 0x270   : > { %v811_v53 = vadd.f32 %v810_v52, %v2447_v50  ;;  %v812_v54 = vpop.f32.mrb[1].mxu1 }
 0x271   : > { %v813_v55 = vadd.f32 %v812_v54, %v2449_v51  ;;  %v814_v56 = vpop.f32.mrb[2].mxu1 }
 0x272   : > { %v815_v57 = vadd.f32 %v814_v56, %v2447_v50  ;;  %v816_v58 = vpop.f32.mrb[3].mxu1  ;;  %v889_v60 = vmax.f32 %v811_v53, 0.0 }
 0x273   : > { %v817_v59 = vadd.f32 %v816_v58, %v2449_v51  ;;  %v890_v62 = vmax.f32 %v813_v55, 0.0 }
 0x274   : > { %v891_v61 = vmax.f32 %v815_v57, 0.0 }
 0x275   : > { %v892_v63 = vmax.f32 %v817_v59, 0.0 }
 0x276   : > { %v921_v0 = vpack.c.bf16 %v891_v61, %v889_v60 }
 0x277   : > { %v922_v1 = vpack.c.bf16 %v892_v63, %v890_v62  ;;  %v820_v2 = vpop.f32.mrb[4].mxu1 }
 0x278   : > { %v821_v3 = vadd.f32 %v820_v2, %v2447_v50  ;;  %v822_v4 = vpop.f32.mrb[5].mxu1 }
 0x279   : > { %v823_v5 = vadd.f32 %v822_v4, %v2449_v51  ;;  %v824_v6 = vpop.f32.mrb[6].mxu1  ;;  %1104 = vmatprep.mubr.bf16.mxu0 %v922_v1 }
 0x27a   : > { %v825_v7 = vadd.f32 %v824_v6, %v2447_v50  ;;  %v826_v8 = vpop.f32.mrb[7].mxu1  ;;  %1105 = vmatmul.mubr.bf16.vlgmr.msra.gmra.mrb[16].mxu0 %v921_v0  ;;  %v893_v10 = vmax.f32 %v821_v3, 0.0 }
 0x27b   : > { %v827_v9 = vadd.f32 %v826_v8, %v2449_v51  ;;  %v894_v12 = vmax.f32 %v823_v5, 0.0 }
 0x27c   : > { %v895_v11 = vmax.f32 %v825_v7, 0.0 }
 0x27d   : > { %v896_v13 = vmax.f32 %v827_v9, 0.0 }
 0x27e   : > { %v923_v14 = vpack.c.bf16 %v895_v11, %v893_v10 }
 0x27f   : > { %v924_v15 = vpack.c.bf16 %v896_v13, %v894_v12  ;;  %v830_v16 = vpop.f32.mrb[8].mxu1 }
 0x280   : > { %v831_v17 = vadd.f32 %v830_v16, %v2447_v50  ;;  %v832_v18 = vpop.f32.mrb[9].mxu1 }
 0x281   : > { %v833_v19 = vadd.f32 %v832_v18, %v2449_v51  ;;  %v834_v20 = vpop.f32.mrb[10].mxu1  ;;  %1112 = vmatprep.mubr.bf16.mxu0 %v924_v15 }
 0x282   : > { %v835_v21 = vadd.f32 %v834_v20, %v2447_v50  ;;  %v836_v22 = vpop.f32.mrb[11].mxu1  ;;  %1113 = vmatmul.mubr.bf16.gmra.mrb[20].mxu0 %v923_v14  ;;  %v897_v24 = vmax.f32 %v831_v17, 0.0 }
 0x283   : > { %v837_v23 = vadd.f32 %v836_v22, %v2449_v51  ;;  %v898_v26 = vmax.f32 %v833_v19, 0.0 }
 0x284   : > { %v899_v25 = vmax.f32 %v835_v21, 0.0 }
 0x285   : > { %v900_v27 = vmax.f32 %v837_v23, 0.0 }
 0x286   : > { %v925_v28 = vpack.c.bf16 %v899_v25, %v897_v24 }
 0x287   : > { %v926_v29 = vpack.c.bf16 %v900_v27, %v898_v26  ;;  %v840_v30 = vpop.f32.mrb[12].mxu1 }
 0x288   : > { %v841_v31 = vadd.f32 %v840_v30, %v2447_v50  ;;  %v842_v33 = vpop.f32.mrb[13].mxu1 }
 0x289   : > { %v843_v34 = vadd.f32 %v842_v33, %v2449_v51  ;;  %v844_v35 = vpop.f32.mrb[14].mxu1  ;;  %1120 = vmatprep.mubr.bf16.mxu0 %v926_v29 }
 0x28a   : > { %v845_v36 = vadd.f32 %v844_v35, %v2447_v50  ;;  %v846_v37 = vpop.f32.mrb[15].mxu1  ;;  %1121 = vmatmul.mubr.bf16.gmra.mrb[24].mxu0 %v925_v28  ;;  %v901_v39 = vmax.f32 %v841_v31, 0.0 }
 0x28b   : > { %v847_v38 = vadd.f32 %v846_v37, %v2449_v51  ;;  %v902_v41 = vmax.f32 %v843_v34, 0.0 }
 0x28c   : > { %v903_v40 = vmax.f32 %v845_v36, 0.0 }
 0x28d   : > { %v904_v42 = vmax.f32 %v847_v38, 0.0 }
 0x28e   : > { %v927_v43 = vpack.c.bf16 %v903_v40, %v901_v39  ;;  %v1898_v39 = vld [vmem:[#allocation10 + $0x18] sm:$0xff]   ;;  %v1899_v40 = vld [vmem:[#allocation10 + $0x20] sm:$0xff]  }
 0x28f   : > { %v928_v44 = vpack.c.bf16 %v904_v42, %v902_v41  ;;  %v850_v45 = vpop.f32.mrb[16].mxu1  ;;  %1719 = vmatprep.subr.bf16.mxu1 %v1898_v39  ;;  %v1900_v41 = vld [vmem:[#allocation10 + $0x28] sm:$0xff]  }
 0x290   : > { %v851_v46 = vadd.f32 %v850_v45, %v2447_v50  ;;  %v852_v32 = vpop.f32.mrb[17].mxu1  ;;  %1720 = vmatpush3.bf16.msra.mxu1 %v1898_v39 }
 0x291   : > { %v853_v47 = vadd.f32 %v852_v32, %v2449_v51  ;;  %v854_v48 = vpop.f32.mrb[18].mxu1  ;;  %1128 = vmatprep.mubr.bf16.mxu0 %v928_v44  ;;  %1721 = vmatprep.subr.bf16.mxu1 %v1899_v40 }
 0x292   : > { %v855_v49 = vadd.f32 %v854_v48, %v2447_v50  ;;  %v856_v52 = vpop.f32.mrb[19].mxu1  ;;  %1129 = vmatmul.mubr.bf16.gmra.mrb[28].mxu0 %v927_v43  ;;  %v905_v54 = vmax.f32 %v851_v46, 0.0  ;;  %v2486_v43 = vld [vmem:[%s2583_s6] ss:$0 sm:$0xff] }
 0x293   : > { %v857_v53 = vadd.f32 %v856_v52, %v2449_v51  ;;  %v906_v56 = vmax.f32 %v853_v47, 0.0 }
 0x294   : > { %v907_v55 = vmax.f32 %v855_v49, 0.0  ;;  %1722 = vmatpush3.bf16.msra.mxu1 %v1899_v40 }
 0x295   : > { %v908_v57 = vmax.f32 %v857_v53, 0.0  ;;  %1723 = vmatprep.subr.bf16.mxu1 %v1900_v41 }
 0x296   : > { %v929_v58 = vpack.c.bf16 %v907_v55, %v905_v54 }
 0x297   : > { %v930_v59 = vpack.c.bf16 %v908_v57, %v906_v56  ;;  %v860_v60 = vpop.f32.mrb[20].mxu1 }
 0x298   : > { %v861_v61 = vadd.f32 %v860_v60, %v2447_v50  ;;  %v862_v62 = vpop.f32.mrb[21].mxu1  ;;  %1724 = vmatpush3.bf16.msra.mxu1 %v1900_v41 }
 0x299   : > { %v863_v63 = vadd.f32 %v862_v62, %v2449_v51  ;;  %v864_v0 = vpop.f32.mrb[22].mxu1  ;;  %1136 = vmatprep.mubr.bf16.mxu0 %v930_v59 }
 0x29a   : > { %v865_v1 = vadd.f32 %v864_v0, %v2447_v50  ;;  %v866_v2 = vpop.f32.mrb[23].mxu1  ;;  %1137 = vmatmul.mubr.bf16.gmra.mrb[32].mxu0 %v929_v58  ;;  %v909_v4 = vmax.f32 %v861_v61, 0.0 }
 0x29b   : > { %v867_v3 = vadd.f32 %v866_v2, %v2449_v51  ;;  %v910_v6 = vmax.f32 %v863_v63, 0.0 }
 0x29c   : > { %v911_v5 = vmax.f32 %v865_v1, 0.0 }
 0x29d   : > { %v912_v7 = vmax.f32 %v867_v3, 0.0 }
 0x29e   : > { %v931_v8 = vpack.c.bf16 %v911_v5, %v909_v4 }
 0x29f   : > { %v932_v9 = vpack.c.bf16 %v912_v7, %v910_v6  ;;  %v870_v10 = vpop.f32.mrb[24].mxu1 }
 0x2a0   : > { %v871_v11 = vadd.f32 %v870_v10, %v2447_v50  ;;  %v872_v12 = vpop.f32.mrb[25].mxu1 }
 0x2a1   : > { %v873_v13 = vadd.f32 %v872_v12, %v2449_v51  ;;  %v874_v14 = vpop.f32.mrb[26].mxu1  ;;  %1144 = vmatprep.mubr.bf16.mxu0 %v932_v9 }
 0x2a2   : > { %v875_v15 = vadd.f32 %v874_v14, %v2447_v50  ;;  %v876_v16 = vpop.f32.mrb[27].mxu1  ;;  %1145 = vmatmul.mubr.bf16.gmra.mrb[36].mxu0 %v931_v8  ;;  %v913_v18 = vmax.f32 %v871_v11, 0.0 }
 0x2a3   : > { %v877_v17 = vadd.f32 %v876_v16, %v2449_v51  ;;  %v914_v20 = vmax.f32 %v873_v13, 0.0 }
 0x2a4   : > { %v915_v19 = vmax.f32 %v875_v15, 0.0 }
 0x2a5   : > { %v916_v21 = vmax.f32 %v877_v17, 0.0 }
 0x2a6   : > { %v933_v22 = vpack.c.bf16 %v915_v19, %v913_v18 }
 0x2a7   : > { %v934_v23 = vpack.c.bf16 %v916_v21, %v914_v20  ;;  %v880_v24 = vpop.f32.mrb[28].mxu1 }
 0x2a8   : > { %v881_v25 = vadd.f32 %v880_v24, %v2447_v50  ;;  %v882_v26 = vpop.f32.mrb[29].mxu1 }
 0x2a9   : > { %v883_v27 = vadd.f32 %v882_v26, %v2449_v51  ;;  %v884_v28 = vpop.f32.mrb[30].mxu1  ;;  %1152 = vmatprep.mubr.bf16.mxu0 %v934_v23 }
 0x2aa   : > { %v885_v29 = vadd.f32 %v884_v28, %v2447_v50  ;;  %v886_v30 = vpop.f32.mrb[31].mxu1  ;;  %1153 = vmatmul.mubr.bf16.gmra.mrb[40].mxu0 %v933_v22  ;;  %v917_v33 = vmax.f32 %v881_v25, 0.0  ;;  %v1901_v50 = vld [vmem:[#allocation10 + $0x30] sm:$0xff]  }
 0x2ab   : > { %v887_v31 = vadd.f32 %v886_v30, %v2449_v51  ;;  %v918_v35 = vmax.f32 %v883_v27, 0.0  ;;  %1725 = vmatprep.subr.bf16.mxu1 %v1901_v50  ;;  %v1902_v51 = vld [vmem:[#allocation10 + $0x38] sm:$0xff]  }
 0x2ac   : > { %v919_v34 = vmax.f32 %v885_v29, 0.0  ;;  %1726 = vmatpush3.bf16.msra.mxu1 %v1901_v50 }
 0x2ad   : > { %v920_v36 = vmax.f32 %v887_v31, 0.0  ;;  %1727 = vmatprep.subr.bf16.mxu1 %v1902_v51 }
 0x2ae   : > { %v935_v37 = vpack.c.bf16 %v919_v34, %v917_v33 }
 0x2af   : > { %v936_v38 = vpack.c.bf16 %v920_v36, %v918_v35 }
 0x2b0   : > { %1728 = vmatpush3.bf16.msra.mxu1 %v1902_v51 }
 0x2b1   : > { %1160 = vmatprep.mubr.bf16.mxu0 %v936_v38 }
 0x2b2   : > { %1161 = vmatmul.mubr.bf16.gmra.mrb[44].mxu0 %v935_v37 }
 0x34d   : > { %v1617_v42 = vpop.f32.mrb[16].mxu0 }
 0x34e   : > { %v1618_v44 = vpop.f32.mrb[17].mxu0 }
 0x34f   : > { %v1619_v45 = vadd.f32 %v1618_v44, %v1617_v42  ;;  %v1620_v46 = vpop.f32.mrb[18].mxu0 }
 0x350   : > { %v1621_v32 = vpop.f32.mrb[19].mxu0 }
 0x351   : > { %v1107_v47 = vadd.f32 %v1619_v45, %v2486_v43  ;;  %v1622_v48 = vadd.f32 %v1621_v32, %v1620_v46 }
 0x353   : > { %v1110_v49 = vadd.f32 %v1622_v48, %v2486_v43  ;;  %v1169_v52 = vmax.f32 %v1107_v47, 0.0 }
 0x355   : > { %v1170_v53 = vmax.f32 %v1110_v49, 0.0  ;;  %v1623_v54 = vpop.f32.mrb[20].mxu0 }
 0x356   : > { %v1624_v55 = vpop.f32.mrb[21].mxu0 }
 0x357   : > { %v1625_v56 = vadd.f32 %v1624_v55, %v1623_v54  ;;  %v1626_v57 = vpop.f32.mrb[22].mxu0  ;;  %v1185_v58 = vpack.c.bf16 %v1170_v53, %v1169_v52 }
 0x358   : > { %v1627_v59 = vpop.f32.mrb[23].mxu0 }
 0x359   : > { %v1115_v60 = vadd.f32 %v1625_v56, %v2486_v43  ;;  %v1628_v61 = vadd.f32 %v1627_v59, %v1626_v57  ;;  %1729 = vmatprep.mubr.bf16.mxu1 %v1185_v58 }
 0x35b   : > { %v1118_v62 = vadd.f32 %v1628_v61, %v2486_v43  ;;  %v1171_v63 = vmax.f32 %v1115_v60, 0.0 }
 0x35d   : > { %v1172_v0 = vmax.f32 %v1118_v62, 0.0  ;;  %v1629_v1 = vpop.f32.mrb[24].mxu0 }
 0x35e   : > { %v1630_v2 = vpop.f32.mrb[25].mxu0 }
 0x35f   : > { %v1186_v3 = vpack.c.bf16 %v1172_v0, %v1171_v63  ;;  %v1631_v4 = vadd.f32 %v1630_v2, %v1629_v1  ;;  %v1632_v5 = vpop.f32.mrb[26].mxu0 }
 0x360   : > { %v1633_v6 = vpop.f32.mrb[27].mxu0 }
 0x361   : > { %v1123_v7 = vadd.f32 %v1631_v4, %v2486_v43  ;;  %v1634_v8 = vadd.f32 %v1633_v6, %v1632_v5  ;;  %1730 = vmatmul.mubr.bf16.vlgmr.msra.gmra.mrb[32].mxu1 %v1186_v3  ;;  %v1569_v5 = vld [vmem:[%s2585_s8] ss:$0 sm:$0xff] }
 0x363   : > { %v1126_v9 = vadd.f32 %v1634_v8, %v2486_v43  ;;  %v1173_v10 = vmax.f32 %v1123_v7, 0.0 }
 0x365   : > { %v1174_v11 = vmax.f32 %v1126_v9, 0.0  ;;  %v1635_v12 = vpop.f32.mrb[28].mxu0 }
 0x366   : > { %v1636_v13 = vpop.f32.mrb[29].mxu0 }
 0x367   : > { %v1637_v14 = vadd.f32 %v1636_v13, %v1635_v12  ;;  %v1638_v15 = vpop.f32.mrb[30].mxu0  ;;  %v1187_v16 = vpack.c.bf16 %v1174_v11, %v1173_v10 }
 0x368   : > { %v1639_v17 = vpop.f32.mrb[31].mxu0 }
 0x369   : > { %v1131_v18 = vadd.f32 %v1637_v14, %v2486_v43  ;;  %v1640_v19 = vadd.f32 %v1639_v17, %v1638_v15  ;;  %1733 = vmatprep.mubr.bf16.mxu1 %v1187_v16 }
 0x36b   : > { %v1134_v20 = vadd.f32 %v1640_v19, %v2486_v43  ;;  %v1175_v21 = vmax.f32 %v1131_v18, 0.0 }
 0x36d   : > { %v1176_v22 = vmax.f32 %v1134_v20, 0.0  ;;  %v1641_v23 = vpop.f32.mrb[32].mxu0 }
 0x36e   : > { %v1642_v24 = vpop.f32.mrb[33].mxu0 }
 0x36f   : > { %v1643_v25 = vadd.f32 %v1642_v24, %v1641_v23  ;;  %v1644_v26 = vpop.f32.mrb[34].mxu0  ;;  %v1188_v27 = vpack.c.bf16 %v1176_v22, %v1175_v21 }
 0x370   : > { %v1645_v28 = vpop.f32.mrb[35].mxu0 }
 0x371   : > { %v1139_v29 = vadd.f32 %v1643_v25, %v2486_v43  ;;  %v1646_v30 = vadd.f32 %v1645_v28, %v1644_v26  ;;  %1734 = vmatmul.mubr.bf16.gmra.mrb[36].mxu1 %v1188_v27 }
 0x373   : > { %v1142_v31 = vadd.f32 %v1646_v30, %v2486_v43  ;;  %v1177_v33 = vmax.f32 %v1139_v29, 0.0 }
 0x375   : > { %v1178_v34 = vmax.f32 %v1142_v31, 0.0  ;;  %v1647_v35 = vpop.f32.mrb[36].mxu0 }
 0x376   : > { %v1648_v36 = vpop.f32.mrb[37].mxu0 }
 0x377   : > { %v1649_v37 = vadd.f32 %v1648_v36, %v1647_v35  ;;  %v1650_v38 = vpop.f32.mrb[38].mxu0  ;;  %v1189_v39 = vpack.c.bf16 %v1178_v34, %v1177_v33 }
 0x378   : > { %v1651_v40 = vpop.f32.mrb[39].mxu0 }
 0x379   : > { %v1147_v41 = vadd.f32 %v1649_v37, %v2486_v43  ;;  %v1652_v50 = vadd.f32 %v1651_v40, %v1650_v38  ;;  %1737 = vmatprep.mubr.bf16.mxu1 %v1189_v39 }
 0x37b   : > { %v1150_v51 = vadd.f32 %v1652_v50, %v2486_v43  ;;  %v1179_v42 = vmax.f32 %v1147_v41, 0.0 }
 0x37d   : > { %v1180_v44 = vmax.f32 %v1150_v51, 0.0  ;;  %v1653_v45 = vpop.f32.mrb[40].mxu0 }
 0x37e   : > { %v1654_v46 = vpop.f32.mrb[41].mxu0 }
 0x37f   : > { %v1655_v32 = vadd.f32 %v1654_v46, %v1653_v45  ;;  %v1656_v47 = vpop.f32.mrb[42].mxu0  ;;  %v1190_v48 = vpack.c.bf16 %v1180_v44, %v1179_v42 }
 0x380   : > { %v1657_v49 = vpop.f32.mrb[43].mxu0 }
 0x381   : > { %v1155_v52 = vadd.f32 %v1655_v32, %v2486_v43  ;;  %v1658_v53 = vadd.f32 %v1657_v49, %v1656_v47  ;;  %1738 = vmatmul.mubr.bf16.gmra.mrb[40].mxu1 %v1190_v48 }
 0x383   : > { %v1158_v54 = vadd.f32 %v1658_v53, %v2486_v43  ;;  %v1181_v55 = vmax.f32 %v1155_v52, 0.0 }
 0x385   : > { %v1182_v56 = vmax.f32 %v1158_v54, 0.0  ;;  %v1659_v57 = vpop.f32.mrb[44].mxu0 }
 0x386   : > { %v1660_v58 = vpop.f32.mrb[45].mxu0 }
 0x387   : > { %v1661_v59 = vadd.f32 %v1660_v58, %v1659_v57  ;;  %v1662_v60 = vpop.f32.mrb[46].mxu0  ;;  %v1191_v61 = vpack.c.bf16 %v1182_v56, %v1181_v55 }
 0x388   : > { %v1663_v62 = vpop.f32.mrb[47].mxu0 }
 0x389   : > { %v1163_v63 = vadd.f32 %v1661_v59, %v2486_v43  ;;  %v1664_v0 = vadd.f32 %v1663_v62, %v1662_v60  ;;  %1741 = vmatprep.mubr.bf16.mxu1 %v1191_v61 }
 0x38b   : > { %v1166_v1 = vadd.f32 %v1664_v0, %v2486_v43  ;;  %v1183_v2 = vmax.f32 %v1163_v63, 0.0 }
 0x38d   : > { %v1184_v3 = vmax.f32 %v1166_v1, 0.0 }
 0x38f   : > { %v1192_v4 = vpack.c.bf16 %v1184_v3, %v1183_v2 }
 0x391   : > { %1742 = vmatmul.mubr.bf16.gmra.mrb[44].mxu1 %v1192_v4 }
 0x434   : > { %v1731_v6 = vpop.f32.mrb[32].mxu1 }
 0x435   : > { %v1307_v7 = vadd.f32 %v1731_v6, %v1569_v5  ;;  %v1298_v8 = vpop.f32.mrb[33].mxu1 }
 0x436   : > { %v1299_v9 = vadd.f32 %v1569_v5, %v1298_v8  ;;  %v1732_v10 = vpop.f32.mrb[34].mxu1 }
 0x437   : > { %1363 = vst [vmem:[%s2508_s28 + $0x10] sm:$0xff] %v1307_v7  ;;  %v1310_v43 = vadd.f32 %v1732_v10, %v1569_v5  ;;  %v1301_v11 = vpop.f32.mrb[35].mxu1 }
 0x438   : > { %1361 = vst [vmem:[%s2508_s28] sm:$0xff] %v1299_v9  ;;  %v1302_v12 = vadd.f32 %v1569_v5, %v1301_v11 }
 0x439   : > { %1364 = vst [vmem:[%s2508_s28 + $0x18] sm:$0xff] %v1310_v43 }
 0x43a   : > { %1362 = vst [vmem:[%s2508_s28 + $0x8] sm:$0xff] %v1302_v12 }
 0x444   : > { %v1735_v13 = vpop.f32.mrb[36].mxu1 }
 0x445   : > { %v1323_v14 = vadd.f32 %v1735_v13, %v1569_v5  ;;  %v1314_v15 = vpop.f32.mrb[37].mxu1 }
 0x446   : > { %v1315_v16 = vadd.f32 %v1569_v5, %v1314_v15  ;;  %v1736_v17 = vpop.f32.mrb[38].mxu1 }
 0x447   : > { %1367 = vst [vmem:[%s2508_s28 + $0x30] sm:$0xff] %v1323_v14  ;;  %v1326_v18 = vadd.f32 %v1736_v17, %v1569_v5  ;;  %v1317_v19 = vpop.f32.mrb[39].mxu1 }
 0x448   : > { %1365 = vst [vmem:[%s2508_s28 + $0x20] sm:$0xff] %v1315_v16  ;;  %v1318_v20 = vadd.f32 %v1569_v5, %v1317_v19 }
 0x449   : > { %1368 = vst [vmem:[%s2508_s28 + $0x38] sm:$0xff] %v1326_v18 }
 0x44a   : > { %1366 = vst [vmem:[%s2508_s28 + $0x28] sm:$0xff] %v1318_v20 }
 0x454   : > { %v1739_v21 = vpop.f32.mrb[40].mxu1 }
 0x455   : > { %v1339_v22 = vadd.f32 %v1739_v21, %v1569_v5  ;;  %v1330_v23 = vpop.f32.mrb[41].mxu1 }
 0x456   : > { %v1331_v24 = vadd.f32 %v1569_v5, %v1330_v23  ;;  %v1740_v25 = vpop.f32.mrb[42].mxu1 }
 0x457   : > { %1371 = vst [vmem:[%s2508_s28 + $0x50] sm:$0xff] %v1339_v22  ;;  %v1342_v26 = vadd.f32 %v1740_v25, %v1569_v5  ;;  %v1333_v27 = vpop.f32.mrb[43].mxu1 }
 0x458   : > { %1369 = vst [vmem:[%s2508_s28 + $0x40] sm:$0xff] %v1331_v24  ;;  %v1334_v28 = vadd.f32 %v1569_v5, %v1333_v27 }
 0x459   : > { %1372 = vst [vmem:[%s2508_s28 + $0x58] sm:$0xff] %v1342_v26 }
 0x45a   : > { %1370 = vst [vmem:[%s2508_s28 + $0x48] sm:$0xff] %v1334_v28 }
 0x464   : > { %v1743_v29 = vpop.f32.mrb[44].mxu1 }
 0x465   : > { %v1355_v30 = vadd.f32 %v1743_v29, %v1569_v5  ;;  %v1346_v31 = vpop.f32.mrb[45].mxu1 }
 0x466   : > { %v1347_v33 = vadd.f32 %v1569_v5, %v1346_v31  ;;  %v1744_v34 = vpop.f32.mrb[46].mxu1 }
 0x467   : > { %1375 = vst [vmem:[%s2508_s28 + $0x70] sm:$0xff] %v1355_v30  ;;  %v1358_v35 = vadd.f32 %v1744_v34, %v1569_v5  ;;  %v1349_v36 = vpop.f32.mrb[47].mxu1 }
 0x468   : > { %1373 = vst [vmem:[%s2508_s28 + $0x60] sm:$0xff] %v1347_v33  ;;  %v1350_v37 = vadd.f32 %v1569_v5, %v1349_v36 }
 0x469   : > { %1376 = vst [vmem:[%s2508_s28 + $0x78] sm:$0xff] %v1358_v35 }
 0x46a   : > { %1374 = vst [vmem:[%s2508_s28 + $0x68] sm:$0xff] %v1350_v37 }
 0x46b   : > { %2058 = shalt.err (!%p2055_p13)
}
 0x46c   : > { %s2059_s26 = scalar_lea.hbm %s2528_s17, 2048  ;;  %s2063_s28 = scalar_lea.hbm %s2616_s15, 4096 }
 0x46d   : > { %p2060_p9 = scmp.ne.s32.totalorder %s2528_s17, %s2059_s26  ;;  %p2064_p4 = scmp.lt.u32.totalorder %s2528_s17, %s2616_s15 }
 0x46e   : > { %p2065_p8 = scmp.lt.u32.totalorder %s2063_s28, %s2059_s26  ;;  %p2067_p3 = scmp.lt.u32.totalorder %s2059_s26, %s2528_s17 }
 0x46f   : > { %p2061_p0 = pnand %p2060_p9, %p2352_p10 }
 0x470   : > { %p2066_p6 = por %p2065_p8, %p2064_p4 }
 0x471   : > { %p2062_p11 = pneg %p2061_p0 }
 0x472   : > { %p2068_p5 = por %p2067_p3, %p2066_p6 }
 0x474   : > { %p2069_p7 = pnand %p2068_p5, %p2062_p11 }
 0x476   : > { %2072 = shalt.err (!%p2069_p7)
}
 0x477   : > { %s2132_s29 = smov 128   ;;  %s2133_s22 = smov 8  }
 0x478   : > { %1763 = dma.vmem_to_hbm [thread:$0]  (%p2352_p10), %s2530_s21, 2048, %s2528_s17, %s1378_s13, %s2132_s29, %s2132_s29, %s2133_s22  }
 0x479 PF: > { %s2617_s9 = sld [smem:[#allocation16_spill]]  ;;  %s2618_s19 = sld [smem:[#allocation17_spill]] }
 0x47a   : > { %p2620_p1 = scmp.ge.s32.totalorder %s2119_s12, 2 }
 0x47f   : > { %s1406_s25 = sand.u32 1, %s2617_s9   ;;  %p2619_p12 = scmp.ne.s32.totalorder %s2618_s19, 0 }
 0x480   : > { %s1407_s26 = scalar_lea.sflag [#allocation4], %s1406_s25 }
 0x481   : > { %p1783_p2 = pnand %p2620_p1, %p2619_p12 }
 0x483   : > { %2102 = dma.done.wait (!%p1783_p2), %s1407_s26, 2048  }
 0x484   : > { %2104 = vsyncadd (!%p1783_p2), %s1407_s26, 4294965248  ;;  %p24_p13 = scmp.ge.s32.totalorder %s2342_s14, 4   ;;  %s2621_s30 = smov %s2111_s10 }
 0x485   : > { %s2622_s10 = smov %s2115_s11  ;;  %s2623_s11 = smov %s2358_s27 }
 0x486   : > { %s2624_s12 = smov %s2342_s14  ;;  %26 = sbr.rel (!%p24_p13) target bundleno = 9 (0x9), region = 117 }
 0x48d   :  { %1412 = vsyncpa [#allocation3], 1 }
 0x48e   :  { %1414 = vsyncpa [#allocation3 + $0x1], 1 }
 0x48f   :  { %1415 = vsyncpa [#allocation6], 1 }
 0x490   :  { %1416 = vsyncpa [#allocation9], 1 }
 0x491   :  { %1417 = vsyncpa [#allocation4], 1 }
 0x492   :  { %1419 = vsyncpa [#allocation4 + $0x1], 1 }

</bundles_post_ra>
